<compile_context>
chip_gen: v5e
topology: v5e:2x2
jax: 0.10.0
libtpu: 0.0.40
codegen_flags: <defaults>
</compile_context>

<pallas_src>
import jax
import jax.numpy as jnp
from jax.experimental import pallas as pl
from jax.experimental.pallas import tpu as pltpu


_MAX_Q = 127.0  # 2 ** (8 - 1) - 1


def _round_up(x, m):
    return (x + m - 1) // m * m


# ------------- kernel 1: per-tensor 8-bit symmetric weight quantization ------
def quantize_weight_kernel(w_ref, wq_ref):
    """w_ref/wq_ref: [K_pad, O_pad] f32 (already transposed & zero-padded).

    Runs ONCE over the full weight: the abs-max stays a true per-tensor
    reduction, and the transpose-to-[K, O] layout is paid once (in the
    wrapper), never per matmul tile."""
    w = w_ref[...]
    amax = jnp.max(jnp.abs(w), keepdims=True)                  # (1, 1)
    scale = amax / _MAX_Q                                      # per-tensor scale
    safe = jnp.where(scale > 0.0, scale, jnp.float32(1.0))     # guard all-zero w
    # sign(w)*clip(round(|w|/s),0,127)*s  ==  clip(round(w/s),-127,127)*s
    q = jnp.clip(jnp.round(w * pl.reciprocal(safe, approx=False)), -_MAX_Q, _MAX_Q)
    wq_ref[...] = q * safe


# ------------- kernel 2: tiled conv-as-matmul + bias (MXU) -------------------
def qconv_matmul_kernel(p_ref, wq_ref, b_ref, o_ref, acc_ref):
    """Grid: (M tiles, K tiles).  K is the reduction ("arbitrary") axis.

       p_ref  : [TM, TK]     im2col patch tile (streamed)
       wq_ref : [TK, O_pad]  quantized weight K-tile (streamed, canonical RHS)
       b_ref  : [1, O_pad]   bias (constant block)
       o_ref  : [TM, O_pad]  output tile (resident across K; written at last k)
       acc_ref: [TM, O_pad]  f32 accumulator scratch"""
    k = pl.program_id(1)

    @pl.when(k == 0)
    def _():
        acc_ref[...] = jnp.zeros_like(acc_ref)

    acc_ref[...] += jnp.dot(p_ref[...], wq_ref[...],
                            preferred_element_type=jnp.float32)

    @pl.when(k == pl.num_programs(1) - 1)
    def _():
        o_ref[...] = (acc_ref[...] + b_ref[...]).astype(o_ref.dtype)


# ------------------------------ tile / VMEM sizing ---------------------------
def _vmem_limit_bytes():
    # ~75% of per-TensorCore physical VMEM (v5e/v6e: 128 MiB -> 96 MiB,
    # v7x: 64 MiB -> 48 MiB), capped at 100 MiB.  Conservative fallback if the
    # hardware query is unavailable.
    cap = 0
    try:
        cap = int(pltpu.get_tpu_info().vmem_capacity_bytes)
    except Exception:
        cap = 0
    if not cap:
        cap = 64 * 1024 * 1024  # v7x per-TC size (worst case)
    return min(cap * 3 // 4, 100 * 1024 * 1024)


def _choose_tiles(M, K, O_pad, tile_budget, block_m=None, block_k=None):
    """Pick (block_m, block_k) so all pipelined buffers fit the VMEM budget."""
    K_pad128 = _round_up(K, 128)
    M_up = _round_up(M, 8)

    def fits(bm, bk):
        need = 4 * (2 * bm * bk          # patch tile, double-buffered
                    + 2 * bk * O_pad     # weight K-tile, double-buffered
                    + 2 * bm * O_pad     # output tile, double-buffered
                    + bm * O_pad         # f32 accumulator scratch
                    + O_pad)             # bias
        return need <= tile_budget

    if block_k is None:
        bk_list = [bk for bk in (1024, 512, 256, 128) if bk <= K_pad128] or [128]
    else:
        bk_list = [max(128, min(_round_up(block_k, 128), K_pad128))]

    if block_m is None:
        cap = min(1024, _round_up(M, 256) if M >= 256 else M_up)
        bm_list = [bm for bm in (1024, 512, 256, 128, 64, 32, 16, 8) if bm <= cap] or [8]
    else:
        bm_list = [max(8, min(_round_up(block_m, 8), M_up))]

    for bm in bm_list:
        for bk in bk_list:
            if fits(bm, bk):
                return bm, bk
    return bm_list[-1], bk_list[-1]


# ------------------------------ Wrapper --------------------------------------
def quantized_conv2d8(x, weight, bias, stride=1, padding=0,
                      block_m=None, block_k=None):
    """x: [N, C, H, W] f32; weight: [O, C, KH, KW] f32; bias: [O] f32 or None.
    Returns [N, O, OH, OW] f32, matching F.conv2d(x, ste8(weight), bias)."""
    N, C, H, W = x.shape
    O, _, KH, KW = weight.shape
    OH = (H + 2 * padding - KH) // stride + 1
    OW = (W + 2 * padding - KW) // stride + 1
    M = N * OH * OW
    K = C * KH * KW

    if bias is None:
        bias = jnp.zeros((O,), dtype=jnp.float32)

    # Lane-dense output-channel padding.
    O_pad = _round_up(O, 128)

    vmem_limit = _vmem_limit_bytes()
    block_m, block_k = _choose_tiles(M, K, O_pad, int(vmem_limit * 0.85),
                                     block_m, block_k)
    K_pad = _round_up(K, block_k)        # multiple of block_k (and of 128)
    M_pad = _round_up(M, block_m)

    # --- im2col (plain-JAX glue): pad then gather strided shifted views. -----
    # K ordering is c-major then kh then kw == weight.reshape(O, C*KH*KW).
    # TODO(synk): fuse this into the kernel (HBM gather) to avoid the KH*KW
    #             activation blow-up through HBM.
    xp = jnp.pad(x, ((0, 0), (0, 0), (padding, padding), (padding, padding)))
    cols = []
    for kh in range(KH):
        for kw in range(KW):
            cols.append(
                xp[:, :, kh:kh + OH * stride:stride, kw:kw + OW * stride:stride]
            )  # [N, C, OH, OW]
    pat = jnp.stack(cols, axis=2).reshape(N, C * KH * KW, OH, OW)
    pat = pat.transpose(0, 2, 3, 1).reshape(M, K)                    # [M, K]
    pat = jnp.pad(pat, ((0, M_pad - M), (0, K_pad - K)))             # [M_pad, K_pad]

    # Weight transposed ONCE to the canonical RHS layout [K, O] (zero padding
    # changes neither the per-tensor abs-max nor the matmul).
    w2d = jnp.pad(weight.reshape(O, K).T, ((0, K_pad - K), (0, O_pad - O)))
    b2d = jnp.pad(bias.reshape(1, O), ((0, 0), (0, O_pad - O)))

    # --- step 1: quantize the weight once, per-tensor, pre-transposed. -------
    wq = pl.pallas_call(
        quantize_weight_kernel,
        out_shape=jax.ShapeDtypeStruct((K_pad, O_pad), jnp.float32),
        in_specs=[pl.BlockSpec(memory_space=pltpu.MemorySpace.VMEM)],
        out_specs=pl.BlockSpec(memory_space=pltpu.MemorySpace.VMEM),
        compiler_params=pltpu.CompilerParams(vmem_limit_bytes=vmem_limit),
    )(w2d)

    # --- step 2: tiled conv-as-matmul over (M, K) with pipelined DMAs. -------
    grid = (M_pad // block_m, K_pad // block_k)
    out2d = pl.pallas_call(
        qconv_matmul_kernel,
        out_shape=jax.ShapeDtypeStruct((M_pad, O_pad), jnp.float32),
        grid_spec=pltpu.PrefetchScalarGridSpec(
            num_scalar_prefetch=0,
            grid=grid,
            in_specs=[
                pl.BlockSpec((block_m, block_k), lambda i, k: (i, k)),  # patch
                pl.BlockSpec((block_k, O_pad), lambda i, k: (k, 0)),    # w_q
                pl.BlockSpec((1, O_pad), lambda i, k: (0, 0)),          # bias
            ],
            out_specs=pl.BlockSpec((block_m, O_pad), lambda i, k: (i, 0)),
            scratch_shapes=[pltpu.VMEM((block_m, O_pad), jnp.float32)],
        ),
        compiler_params=pltpu.CompilerParams(
            dimension_semantics=("parallel", "arbitrary"),  # M split on megacore
            vmem_limit_bytes=vmem_limit,
        ),
    )(pat, wq, b2d)

    # Slice off M/O padding, back to NCHW (matches module output layout).
    return out2d[:M, :O].reshape(N, OH, OW, O).transpose(0, 3, 1, 2)


# ------------------------------- Reference -----------------------------------
def _reference(x, weight, bias, stride, padding):
    abs_w = jnp.abs(weight)
    scale = jnp.max(abs_w) / _MAX_Q
    w_q = jnp.sign(weight) * jnp.clip(jnp.round(abs_w / scale), 0.0, _MAX_Q) * scale
    y = jax.lax.conv_general_dilated(
        x, w_q, window_strides=(stride, stride),
        padding=[(padding, padding), (padding, padding)],
        dimension_numbers=("NCHW", "OIHW", "NCHW"),
    )
    return y + bias.reshape(1, -1, 1, 1)


# --------------------------------- Main ---------------------------------------
if __name__ == "__main__":
    def run_case(N, C, O, H, W, KH, KW, stride, padding, key, **tiles):
        kx, kw_key, kb_key = jax.random.split(key, 3)
        x = jax.random.normal(kx, (N, C, H, W), dtype=jnp.float32)
        # Deterministic PyTorch-like Conv2d init: U(-1/sqrt(fan_in), 1/sqrt(fan_in))
        fan_in = C * KH * KW
        bound = 1.0 / (fan_in ** 0.5)
        weight = jax.random.uniform(kw_key, (O, C, KH, KW), jnp.float32, -bound, bound)
        bias = jax.random.uniform(kb_key, (O,), jnp.float32, -bound, bound)

        out = quantized_conv2d8(x, weight, bias, stride=stride, padding=padding,
                                **tiles)
        out = jax.block_until_ready(out)

        ref = _reference(x, weight, bias, stride, padding)
        OH = (H + 2 * padding - KH) // stride + 1
        OW = (W + 2 * padding - KW) // stride + 1
        assert out.shape == (N, O, OH, OW), out.shape
        assert jnp.allclose(out, ref, atol=1e-4, rtol=1e-4), "mismatch vs reference"

    k1, k2 = jax.random.split(jax.random.PRNGKey(0))

    # Case 1: module-implied small shapes (N=2, C=4, 16x16, 3x3, pad=1).
    # block_m=128 -> 4-step M grid, so the pipelined path is exercised.
    run_case(2, 4, 8, 16, 16, 3, 3, 1, 1, k1, block_m=128)

    # Case 2: K = 16*3*3 = 144 -> K_pad = 256 with block_k=128 -> 2 K steps,
    # exercising the accumulator init/finalize path, plus stride=2.
    run_case(2, 16, 8, 8, 8, 3, 3, 2, 1, k2, block_m=128, block_k=128)

    print("KERNEL_OK")
</pallas_src>

<mosaic_0001>
module attributes {stable_mosaic.version = 11 : i64} {
  func.func @quantize_weight_kernel(%arg0: memref<128x128xf32, #tpu.memory_space<vmem>>, %arg1: memref<128x128xf32, #tpu.memory_space<vmem>>) attributes {dimension_semantics = [], scalar_prefetch = 0 : i64, scratch_operands = 0 : i64, tpu.core_type = #tpu.core_type<tc>} {
    %c0 = arith.constant 0 : index
    %c0_0 = arith.constant 0 : index
    %0 = vector.load %arg0[%c0, %c0_0] : memref<128x128xf32, #tpu.memory_space<vmem>>, vector<128x128xf32>
    %1 = math.absf %0 : vector<128x128xf32>
    %2 = vector.shape_cast %1 : vector<128x128xf32> to vector<1x128x128xf32>
    %cst = arith.constant dense<0xFF800000> : vector<1xf32>
    %3 = vector.multi_reduction <maximumf>, %2, %cst [1, 2] : vector<1x128x128xf32> to vector<1xf32>
    %4 = vector.shape_cast %3 : vector<1xf32> to vector<1x1x1xf32>
    %5 = vector.extract %4[0, 0, 0] : f32 from vector<1x1x1xf32>
    %6 = vector.broadcast %5 : f32 to vector<1x1xf32>
    %cst_1 = arith.constant 1.270000e+02 : f32
    %7 = vector.broadcast %cst_1 : f32 to vector<1x1xf32>
    %8 = arith.divf %6, %7 : vector<1x1xf32>
    %cst_2 = arith.constant 0.000000e+00 : f32
    %9 = vector.broadcast %cst_2 : f32 to vector<1x1xf32>
    %10 = arith.cmpf ogt, %8, %9 : vector<1x1xf32>
    %cst_3 = arith.constant 1.000000e+00 : f32
    %11 = vector.broadcast %cst_3 : f32 to vector<1x1xf32>
    %12 = arith.select %10, %8, %11 : vector<1x1xi1>, vector<1x1xf32>
    %13 = tpu.reciprocal %12 : vector<1x1xf32> -> vector<1x1xf32>
    %14 = vector.broadcast %13 : vector<1x1xf32> to vector<128x128xf32>
    %15 = arith.mulf %0, %14 : vector<128x128xf32>
    %16 = math.roundeven %15 : vector<128x128xf32>
    %cst_4 = arith.constant -1.270000e+02 : f32
    %cst_5 = arith.constant 1.270000e+02 : f32
    %17 = vector.broadcast %cst_4 : f32 to vector<128x128xf32>
    %18 = arith.maximumf %17, %16 : vector<128x128xf32>
    %19 = vector.broadcast %cst_5 : f32 to vector<128x128xf32>
    %20 = arith.minimumf %19, %18 : vector<128x128xf32>
    %21 = vector.broadcast %12 : vector<1x1xf32> to vector<128x128xf32>
    %22 = arith.mulf %20, %21 : vector<128x128xf32>
    %c0_6 = arith.constant 0 : index
    %c0_7 = arith.constant 0 : index
    %23 = vector.load %arg1[%c0_6, %c0_7] : memref<128x128xf32, #tpu.memory_space<vmem>>, vector<128x128xf32>
    tpu.vector_store %arg1[%c0_6, %c0_7], %22 {strides = array<i32>} : memref<128x128xf32, #tpu.memory_space<vmem>>, vector<128x128xf32>,
    return
  }
}

</mosaic_0001>

<bundles_post_ra>
// kernel: tpu_custom_call.1
= control target key start
LH: loop header
LB: loop body
LE: loop exit
PB: predicated region body
PF: predicated region fallthrough
CT: control target
= control target key end

     0   :  { %6 = vsyncpa [#allocation3], 0  ;;  %s751_s0 = inlined_call_operand.hbm [shape: f32[128,128], index: 0, kind: input, shape index: {}]   ;;  %s752_s1 = inlined_call_operand.hbm [shape: f32[128,128], index: 1, kind: output, shape index: {}]  }
   0x1   :  { %7 = vsyncpa [#allocation4], 0  ;;  %s12_s8 = sshll.u32 %s751_s0, 4  ;;  %s428_s9 = smov [#allocation2]   ;;  %s13_s8 = int_to_ptr.hbm [resolvable:$true] %s12_s8 }
   0x2   :  { %s14_s10 = sshll.u32 %s428_s9, 4  ;;  %s429_s11 = smov 128   ;;  %s15_s10 = int_to_ptr.vmem [resolvable:$true] %s14_s10 }
   0x3   :  { %s430_s12 = smov 8  }
   0x4   :  { %20 = dma.hbm_to_vmem [thread:$0]  %s13_s8, 2048, %s15_s10, [#allocation3], %s429_s11, %s429_s11, %s430_s12  }
   0x5   :  { %424 = dma.done.wait [#allocation3], 2048  }
   0x6   :  { %425 = vsyncadd [#allocation3], 4294965248  ;;  %v449_v0 = vld [vmem:[#allocation2] sm:$0xff]  ;;  %v451_v1 = vld [vmem:[#allocation2 + $0x8] sm:$0xff]  ;;  %v431_v54 = vmov 127.0   ;;  %s432_s13 = smov [#allocation5]  }
   0x7   :  { %v453_v2 = vld [vmem:[#allocation2 + $0x10] sm:$0xff]  ;;  %v455_v3 = vld [vmem:[#allocation2 + $0x18] sm:$0xff]  ;;  %v457_v4 = vld [vmem:[#allocation2 + $0x20] sm:$0xff]  ;;  %v41_v9 = vand.u32 2147483647, %v449_v0  ;;  %372 = vrcp.f32 %v431_v54  ;;  %s206_s14 = sshll.u32 %s432_s13, 4  ;;  %s207_s14 = int_to_ptr.vmem [resolvable:$true] %s206_s14 }
   0x8   :  { %v459_v5 = vld [vmem:[#allocation2 + $0x28] sm:$0xff]  ;;  %v461_v6 = vld [vmem:[#allocation2 + $0x30] sm:$0xff]  ;;  %v463_v7 = vld [vmem:[#allocation2 + $0x38] sm:$0xff]  ;;  %v42_v13 = vand.u32 2147483647, %v451_v1  ;;  %s208_s17 = sshll.u32 %s752_s1, 4  ;;  %s209_s17 = int_to_ptr.hbm [resolvable:$true] %s208_s17 }
   0x9   :  { %v465_v8 = vld [vmem:[#allocation2 + $0x40] sm:$0xff]  ;;  %v468_v10 = vld [vmem:[#allocation2 + $0x48] sm:$0xff]  ;;  %v470_v11 = vld [vmem:[#allocation2 + $0x50] sm:$0xff]  ;;  %v43_v16 = vand.u32 2147483647, %v453_v2 }
   0xa   :  { %v472_v12 = vld [vmem:[#allocation2 + $0x58] sm:$0xff]  ;;  %v475_v14 = vld [vmem:[#allocation2 + $0x60] sm:$0xff]  ;;  %v477_v15 = vld [vmem:[#allocation2 + $0x68] sm:$0xff]  ;;  %v44_v17 = vand.u32 2147483647, %v455_v3 }
   0xb   :  { %v481_v18 = vld [vmem:[#allocation2 + $0x70] sm:$0xff]  ;;  %v483_v19 = vld [vmem:[#allocation2 + $0x78] sm:$0xff]  ;;  %v45_v20 = vand.u32 2147483647, %v457_v4  ;;  %v46_v21 = vand.u32 2147483647, %v459_v5 }
   0xc   :  { %v47_v22 = vand.u32 2147483647, %v461_v6  ;;  %v48_v23 = vand.u32 2147483647, %v463_v7  ;;  %v49_v24 = vand.u32 2147483647, %v465_v8 }
   0xd   :  { %v50_v25 = vand.u32 2147483647, %v468_v10  ;;  %v51_v26 = vand.u32 2147483647, %v470_v11  ;;  %v52_v27 = vand.u32 2147483647, %v472_v12  ;;  %v57_v28 = vmax.f32 %v41_v9, %v45_v20  ;;  %v373_v55 = vpop.eup %372 }
   0xe   :  { %v53_v29 = vand.u32 2147483647, %v475_v14  ;;  %v54_v30 = vand.u32 2147483647, %v477_v15  ;;  %v55_v31 = vand.u32 2147483647, %v481_v18  ;;  %v58_v32 = vmax.f32 %v42_v13, %v46_v21 }
   0xf   :  { %v56_v33 = vand.u32 2147483647, %v483_v19  ;;  %v59_v34 = vmax.f32 %v43_v16, %v47_v22  ;;  %v60_v35 = vmax.f32 %v44_v17, %v48_v23  ;;  %v61_v36 = vmax.f32 %v57_v28, %v49_v24 }
  0x10   :  { %v62_v37 = vmax.f32 %v58_v32, %v50_v25  ;;  %v83_v56 = vmul.f32 127.0, %v373_v55  ;;  %vm87_vm0 = vweird.f32 %v373_v55 }
  0x11   :  { %v63_v38 = vmax.f32 %v59_v34, %v51_v26  ;;  %v64_v39 = vmax.f32 %v60_v35, %v52_v27  ;;  %v65_v40 = vmax.f32 %v61_v36, %v53_v29 }
  0x12   :  { %v66_v41 = vmax.f32 %v62_v37, %v54_v30  ;;  %v84_v57 = vsub.f32 1.0, %v83_v56 }
  0x13   :  { %v67_v42 = vmax.f32 %v63_v38, %v55_v31  ;;  %v68_v43 = vmax.f32 %v64_v39, %v56_v33 }
  0x14   :  { %v69_v44 = vmax.f32 %v65_v40, %v66_v41  ;;  %v85_v58 = vmul.f32 %v373_v55, %v84_v57 }
  0x15   :  { %v70_v45 = vmax.f32 %v67_v42, %v68_v43 }
  0x16   :  { %v86_v59 = vadd.f32 %v373_v55, %v85_v58 }
  0x17   :  { %v71_v46 = vmax.f32 %v69_v44, %v70_v45 }
  0x18   :  { %v88_v60 = vsel %vm87_vm0, %v373_v55, %v86_v59 }
  0x19   :  { %72 = vmax.xlane.f32.xlu0 %v71_v46 }
  0x8c   :  { %v73_v47 = vpop.xlane.xlu0 %72 }
  0x8d   :  { %v74_v48 = vrot.slane %v73_v47, 4 }
  0x8f   :  { %v75_v49 = vmax.f32 %v73_v47, %v74_v48 }
  0x91   :  { %v76_v50 = vrot.slane %v75_v49, 2 }
  0x93   :  { %v77_v51 = vmax.f32 %v75_v49, %v76_v50 }
  0x95   :  { %v78_v52 = vrot.slane %v77_v51, 1 }
  0x97   :  { %v79_v53 = vmax.f32 %v77_v51, %v78_v52 }
  0x99   :  { %237 = vpush %v79_v53 }
  0xca   :  { %s238_s0 = spop %237 }
  0xcb   :  { %v81_v61 = vstv %s238_s0 }
  0xcc   :  { %v89_v62 = vmul.f32 %v88_v60, %v81_v61 }
  0xce   :  { %vm90_vm1 = vcmp.gt.f32.partialorder %v89_v62, 0.0 }
  0xcf   :  { %v497_v63 = vsel %vm90_vm1, %v89_v62, 1.0 }
  0xd0   :  { %374 = vrcp.f32 %v497_v63  ;;  %v103_v17 = vand.u32 2147483648, %v497_v63  ;;  %v101_v21 = vand.u32 2147483647, %v497_v63  ;;  %vm97_vm3 = vweird.f32 %v497_v63 }
  0xd2   :  { %v104_v23 = vor.u32 1.1754944e-38, %v103_v17  ;;  %vm102_vm5 = vcmp.eq.f32.partialorder %v101_v21, 8.507059e+37 }
  0xd6   :  { %v375_v9 = vpop.eup %374 }
  0xd7   :  { %v93_v13 = vmul.f32 %v375_v9, %v497_v63  ;;  %vm98_vm2 = vweird.f32 %v375_v9 }
  0xd8   :  { %vm99_vm4 = vmor %vm97_vm3, %vm98_vm2 }
  0xd9   :  { %v94_v16 = vsub.f32 1.0, %v93_v13 }
  0xdb   :  { %v95_v20 = vmul.f32 %v375_v9, %v94_v16 }
  0xdd   :  { %v96_v22 = vadd.f32 %v375_v9, %v95_v20 }
  0xdf   :  { %v100_v24 = vsel %vm99_vm4, %v375_v9, %v96_v22 }
  0xe0   :  { %v105_v25 = vsel %vm102_vm5, %v104_v23, %v100_v24 }
  0xe1   :  { %v505_v26 = vmul.f32 %v105_v25, %v449_v0  ;;  %v508_v27 = vmul.f32 %v105_v25, %v451_v1  ;;  %v511_v28 = vmul.f32 %v105_v25, %v453_v2  ;;  %v514_v29 = vmul.f32 %v105_v25, %v455_v3 }
  0xe2   :  { %v518_v31 = vmul.f32 %v105_v25, %v457_v4  ;;  %v523_v0 = vmul.f32 %v105_v25, %v459_v5  ;;  %v526_v34 = vmul.f32 %v105_v25, %v461_v6  ;;  %v529_v2 = vmul.f32 %v105_v25, %v463_v7 }
  0xe3   :  { %v241_v30 = vcvt.f32.s32 %v505_v26  ;;  %v249_v32 = vcvt.f32.s32 %v508_v27  ;;  %v257_v33 = vcvt.f32.s32 %v511_v28  ;;  %v532_v3 = vmul.f32 %v105_v25, %v465_v8 }
  0xe4   :  { %v535_v4 = vmul.f32 %v105_v25, %v468_v10  ;;  %v538_v35 = vmul.f32 %v105_v25, %v470_v11  ;;  %v541_v36 = vmul.f32 %v105_v25, %v472_v12  ;;  %v544_v5 = vmul.f32 %v105_v25, %v475_v14 }
  0xe5   :  { %v242_v1 = vcvt.s32.f32 %v241_v30  ;;  %v265_v6 = vcvt.f32.s32 %v514_v29  ;;  %v239_v7 = vand.u32 2147483647, %v505_v26  ;;  %v250_v37 = vcvt.s32.f32 %v249_v32 }
  0xe6   :  { %v258_v38 = vcvt.s32.f32 %v257_v33  ;;  %v273_v8 = vcvt.f32.s32 %v518_v31  ;;  %v550_v10 = vmul.f32 %v105_v25, %v477_v15  ;;  %v553_v11 = vmul.f32 %v105_v25, %v481_v18 }
  0xe7   :  { %v243_v39 = vand.u32 2147483647, %v242_v1  ;;  %v247_v12 = vand.u32 2147483647, %v508_v27  ;;  %v557_v14 = vmul.f32 %v105_v25, %v483_v19  ;;  %v244_v40 = vand.u32 2147483648, %v505_v26 }
  0xe8   :  { %v255_v41 = vand.u32 2147483647, %v511_v28  ;;  %v266_v42 = vcvt.s32.f32 %v265_v6  ;;  %v263_v43 = vand.u32 2147483647, %v514_v29  ;;  %v271_v44 = vand.u32 2147483647, %v518_v31 }
  0xe9   :  { %v274_v15 = vcvt.s32.f32 %v273_v8  ;;  %v281_v45 = vcvt.f32.s32 %v523_v0  ;;  %vm564_vm6 = vcmp.lt.f32.partialorder %v239_v7, 8388608.0  ;;  %v251_v46 = vand.u32 2147483647, %v250_v37 }
  0xea   :  { %v252_v19 = vand.u32 2147483648, %v508_v27  ;;  %v259_v47 = vand.u32 2147483647, %v258_v38  ;;  %v569_v48 = vor.u32 %v244_v40, %v243_v39  ;;  %vm571_vm7 = vcmp.lt.f32.partialorder %v247_v12, 8388608.0 }
  0xeb   :  { %v282_v50 = vcvt.s32.f32 %v281_v45  ;;  %v289_v51 = vcvt.f32.s32 %v526_v34  ;;  %vm576_vm8 = vcmp.lt.f32.partialorder %v255_v41, 8388608.0  ;;  %v260_v53 = vand.u32 2147483648, %v511_v28 }
  0xec   :  { %v267_v54 = vand.u32 2147483647, %v266_v42  ;;  %v297_v55 = vcvt.f32.s32 %v529_v2  ;;  %vm582_vm9 = vcmp.lt.f32.partialorder %v263_v43, 8388608.0  ;;  %v268_v57 = vand.u32 2147483648, %v514_v29 }
  0xed   :  { %vm587_vm10 = vcmp.lt.f32.partialorder %v271_v44, 8388608.0  ;;  %v275_v59 = vand.u32 2147483647, %v274_v15  ;;  %v591_v60 = vor.u32 %v252_v19, %v251_v46  ;;  %v593_v61 = vor.u32 %v260_v53, %v259_v47 }
  0xee   :  { %v276_v62 = vand.u32 2147483648, %v518_v31  ;;  %v279_v9 = vand.u32 2147483647, %v523_v0  ;;  %v246_v13 = vsel %vm564_vm6, %v569_v48, %v505_v26  ;;  %v283_v16 = vand.u32 2147483647, %v282_v50 }
  0xef   :  { %v290_v17 = vcvt.s32.f32 %v289_v51  ;;  %v305_v20 = vcvt.f32.s32 %v532_v3  ;;  %v602_v21 = vor.u32 %v268_v57, %v267_v54  ;;  %v287_v22 = vand.u32 2147483647, %v526_v34 }
  0xf0   :  { %v298_v23 = vcvt.s32.f32 %v297_v55  ;;  %v313_v24 = vcvt.f32.s32 %v535_v4  ;;  %v606_v25 = vor.u32 %v276_v62, %v275_v59  ;;  %v284_v30 = vand.u32 2147483648, %v523_v0 }
  0xf1   :  { %v295_v32 = vand.u32 2147483647, %v529_v2  ;;  %v306_v33 = vcvt.s32.f32 %v305_v20  ;;  %v254_v1 = vsel %vm571_vm7, %v591_v60, %v508_v27  ;;  %v262_v6 = vsel %vm576_vm8, %v593_v61, %v511_v28 }
  0xf2   :  { %vm618_vm11 = vcmp.lt.f32.partialorder %v279_v9, 8388608.0  ;;  %v314_v37 = vcvt.s32.f32 %v313_v24  ;;  %v622_v38 = vor.u32 %v284_v30, %v283_v16  ;;  %v291_v8 = vand.u32 2147483647, %v290_v17 }
  0xf3   :  { %v292_v39 = vand.u32 2147483648, %v526_v34  ;;  %v321_v12 = vcvt.f32.s32 %v538_v35  ;;  %v270_v27 = vsel %vm582_vm9, %v602_v21, %v514_v29  ;;  %vm630_vm12 = vcmp.lt.f32.partialorder %v287_v22, 8388608.0 }
  0xf4   :  { %v299_v28 = vand.u32 2147483647, %v298_v23  ;;  %v303_v41 = vand.u32 2147483647, %v532_v3  ;;  %v278_v42 = vsel %vm587_vm10, %v606_v25, %v518_v31  ;;  %vm639_vm13 = vcmp.lt.f32.partialorder %v295_v32, 8388608.0 }
  0xf5   :  { %v307_v44 = vand.u32 2147483647, %v306_v33  ;;  %v322_v15 = vcvt.s32.f32 %v321_v12  ;;  %v300_v29 = vand.u32 2147483648, %v529_v2  ;;  %v308_v45 = vand.u32 2147483648, %v532_v3 }
  0xf6   :  { %v315_v46 = vand.u32 2147483647, %v314_v37  ;;  %v329_v19 = vcvt.f32.s32 %v541_v36  ;;  %v286_v47 = vsel %vm618_vm11, %v622_v38, %v523_v0  ;;  %v293_v49 = vor.u32 %v292_v39, %v291_v8 }
  0xf7   :  { %v311_v31 = vand.u32 2147483647, %v535_v4  ;;  %v337_v50 = vcvt.f32.s32 %v544_v5  ;;  %v301_v51 = vor.u32 %v300_v29, %v299_v28  ;;  %vm652_vm14 = vcmp.lt.f32.partialorder %v303_v41, 8388608.0 }
  0xf8   :  { %v316_v53 = vand.u32 2147483648, %v535_v4  ;;  %v319_v54 = vand.u32 2147483647, %v538_v35  ;;  %v309_v55 = vor.u32 %v308_v45, %v307_v44  ;;  %v323_v56 = vand.u32 2147483647, %v322_v15 }
  0xf9   :  { %v327_v57 = vand.u32 2147483647, %v541_v36  ;;  %v345_v0 = vcvt.f32.s32 %v550_v10  ;;  %v330_v59 = vcvt.s32.f32 %v329_v19  ;;  %v335_v60 = vand.u32 2147483647, %v544_v5 }
  0xfa   :  { %v317_v58 = vor.u32 %v316_v53, %v315_v46  ;;  %v353_v61 = vcvt.f32.s32 %v553_v11  ;;  %v294_v62 = vsel %vm630_vm12, %v293_v49, %v526_v34  ;;  %vm665_vm15 = vcmp.lt.f32.partialorder %v311_v31, 8388608.0 }
  0xfb   :  { %v324_v16 = vand.u32 2147483648, %v538_v35  ;;  %v338_v17 = vcvt.s32.f32 %v337_v50  ;;  %v302_v20 = vsel %vm639_vm13, %v301_v51, %v529_v2  ;;  %vm673_vm0 = vcmp.lt.f32.partialorder %v319_v54, 8388608.0 }
  0xfc   :  { %v332_v22 = vand.u32 2147483648, %v541_v36  ;;  %v346_v23 = vcvt.s32.f32 %v345_v0  ;;  %v310_v34 = vsel %vm652_vm14, %v309_v55, %v532_v3  ;;  %vm681_vm1 = vcmp.lt.f32.partialorder %v327_v57, 8388608.0 }
  0xfd   :  { %v325_v24 = vor.u32 %v324_v16, %v323_v56  ;;  %v354_v30 = vcvt.s32.f32 %v353_v61  ;;  %v361_v32 = vcvt.f32.s32 %v557_v14  ;;  %v318_v2 = vsel %vm665_vm15, %v317_v58, %v535_v4 }
  0xfe   :  { %v331_v33 = vand.u32 2147483647, %v330_v59  ;;  %vm689_vm2 = vcmp.lt.f32.partialorder %v335_v60, 8388608.0  ;;  %v340_v37 = vand.u32 2147483648, %v544_v5  ;;  %v339_v3 = vand.u32 2147483647, %v338_v17 }
  0xff   :  { %v343_v38 = vand.u32 2147483647, %v550_v10  ;;  %v348_v8 = vand.u32 2147483648, %v550_v10  ;;  %v362_v39 = vcvt.s32.f32 %v361_v32  ;;  %v347_v12 = vand.u32 2147483647, %v346_v23 }
 0x100   :  { %v351_v40 = vand.u32 2147483647, %v553_v11  ;;  %v221_v4 = vclamps-f32 %v246_v13, 127.0  ;;  %v222_v28 = vclamps-f32 %v254_v1, 127.0  ;;  %v326_v41 = vsel %vm673_vm0, %v325_v24, %v538_v35 }
 0x101   :  { %v355_v43 = vand.u32 2147483647, %v354_v30  ;;  %v223_v44 = vclamps-f32 %v262_v6, 127.0  ;;  %v224_v15 = vclamps-f32 %v270_v27, 127.0  ;;  %v333_v29 = vor.u32 %v332_v22, %v331_v33 }
 0x102   :  { %v356_v45 = vand.u32 2147483648, %v553_v11  ;;  %v363_v46 = vand.u32 2147483647, %v362_v39  ;;  %v225_v19 = vclamps-f32 %v278_v42, 127.0  ;;  %v341_v49 = vor.u32 %v340_v37, %v339_v3 }
 0x103   :  { %v359_v18 = vand.u32 2147483647, %v557_v14  ;;  %v364_v31 = vand.u32 2147483648, %v557_v14  ;;  %v226_v26 = vclamps-f32 %v286_v47, 127.0  ;;  %v349_v48 = vor.u32 %v348_v8, %v347_v12 }
 0x104   :  { %v227_v13 = vclamps-f32 %v294_v62, 127.0  ;;  %v170_v1 = vmul.f32 %v221_v4, %v497_v63  ;;  %v171_v35 = vmul.f32 %v222_v28, %v497_v63  ;;  %v357_v50 = vor.u32 %v356_v45, %v355_v43 }
 0x105   :  { %v228_v6 = vclamps-f32 %v302_v20, 127.0  ;;  %v172_v27 = vmul.f32 %v223_v44, %v497_v63  ;;  %v173_v51 = vmul.f32 %v224_v15, %v497_v63  ;;  %v334_v42 = vsel %vm681_vm1, %v333_v29, %v541_v36 }
 0x106   :  { %v365_v52 = vor.u32 %v364_v31, %v363_v46  ;;  %v229_v53 = vclamps-f32 %v310_v34, 127.0  ;;  %v174_v47 = vmul.f32 %v225_v19, %v497_v63  ;;  %186 = vst [vmem:[#allocation5] sm:$0xff] %v170_v1  ;;  %v342_v54 = vsel %vm689_vm2, %v341_v49, %v544_v5 }
 0x107   :  { %vm719_vm3 = vcmp.lt.f32.partialorder %v343_v38, 8388608.0  ;;  %v230_v56 = vclamps-f32 %v318_v2, 127.0  ;;  %v175_v57 = vmul.f32 %v226_v26, %v497_v63  ;;  %187 = vst [vmem:[#allocation5 + $0x8] sm:$0xff] %v171_v35  ;;  %vm727_vm4 = vcmp.lt.f32.partialorder %v351_v40, 8388608.0 }
 0x108   :  { %v350_v36 = vsel %vm719_vm3, %v349_v48, %v550_v10  ;;  %v231_v58 = vclamps-f32 %v326_v41, 127.0  ;;  %v176_v59 = vmul.f32 %v227_v13, %v497_v63  ;;  %188 = vst [vmem:[#allocation5 + $0x10] sm:$0xff] %v172_v27  ;;  %v358_v5 = vsel %vm727_vm4, %v357_v50, %v553_v11 }
 0x109   :  { %vm360_vm5 = vcmp.lt.f32.partialorder %v359_v18, 8388608.0  ;;  %v232_v60 = vclamps-f32 %v334_v42, 127.0  ;;  %v177_v61 = vmul.f32 %v228_v6, %v497_v63  ;;  %189 = vst [vmem:[#allocation5 + $0x18] sm:$0xff] %v173_v51  ;;  %v233_v10 = vclamps-f32 %v342_v54, 127.0 }
 0x10a   :  { %v366_v62 = vsel %vm360_vm5, %v365_v52, %v557_v14  ;;  %v178_v9 = vmul.f32 %v229_v53, %v497_v63  ;;  %190 = vst [vmem:[#allocation5 + $0x20] sm:$0xff] %v174_v47  ;;  %v234_v16 = vclamps-f32 %v350_v36, 127.0  ;;  %v179_v17 = vmul.f32 %v230_v56, %v497_v63 }
 0x10b   :  { %191 = vst [vmem:[#allocation5 + $0x28] sm:$0xff] %v175_v57  ;;  %v235_v20 = vclamps-f32 %v358_v5, 127.0  ;;  %v180_v21 = vmul.f32 %v231_v58, %v497_v63  ;;  %v236_v11 = vclamps-f32 %v366_v62, 127.0  ;;  %v181_v22 = vmul.f32 %v232_v60, %v497_v63 }
 0x10c   :  { %192 = vst [vmem:[#allocation5 + $0x30] sm:$0xff] %v176_v59  ;;  %v182_v23 = vmul.f32 %v233_v10, %v497_v63  ;;  %v183_v14 = vmul.f32 %v234_v16, %v497_v63 }
 0x10d   :  { %193 = vst [vmem:[#allocation5 + $0x38] sm:$0xff] %v177_v61  ;;  %v184_v34 = vmul.f32 %v235_v20, %v497_v63  ;;  %v185_v24 = vmul.f32 %v236_v11, %v497_v63 }
 0x10e   :  { %194 = vst [vmem:[#allocation5 + $0x40] sm:$0xff] %v178_v9 }
 0x10f   :  { %195 = vst [vmem:[#allocation5 + $0x48] sm:$0xff] %v179_v17 }
 0x110   :  { %196 = vst [vmem:[#allocation5 + $0x50] sm:$0xff] %v180_v21 }
 0x111   :  { %197 = vst [vmem:[#allocation5 + $0x58] sm:$0xff] %v181_v22 }
 0x112   :  { %198 = vst [vmem:[#allocation5 + $0x60] sm:$0xff] %v182_v23 }
 0x113   :  { %199 = vst [vmem:[#allocation5 + $0x68] sm:$0xff] %v183_v14 }
 0x114   :  { %200 = vst [vmem:[#allocation5 + $0x70] sm:$0xff] %v184_v34 }
 0x115   :  { %201 = vst [vmem:[#allocation5 + $0x78] sm:$0xff] %v185_v24 }
 0x116   :  { %214 = dma.vmem_to_hbm [thread:$0]  %s207_s14, 2048, %s209_s17, [#allocation4], %s429_s11, %s429_s11, %s430_s12  }
 0x117   :  { %426 = dma.done.wait [#allocation4], 2048  }
 0x118   :  { %427 = vsyncadd [#allocation4], 4294965248 }
 0x119   :  { %219 = vsyncpa [#allocation3], 1 }
 0x11a   :  { %220 = vsyncpa [#allocation4], 1 }

</bundles_post_ra>
